<compile_context>
chip_gen: v7x
topology: tpu7x:2x2x1
jax: 0.10.0
libtpu: 0.0.40
codegen_flags: <defaults>
</compile_context>

<pallas_src>
import math
import jax
import jax.numpy as jnp
from jax.experimental import pallas as pl
from jax.experimental.pallas import tpu as pltpu

LANE = 128     # TPU lane width: pad hidden/class dims to a multiple of this.
SUBLANE = 8    # TPU sublane width: batch tiles are multiples of this.


def _round_up(x, m):
    return (x + m - 1) // m * m


def _cdiv(a, b):
    return -(-a // b)


def _mlp_kernel(x_ref,
                w1_ref, b1_ref,
                w2_ref, b2_ref,
                w3_ref, b3_ref,
                w4_ref, b4_ref,
                out_ref):
    # x arrives in its original f32 layout; cast to bf16 on the VPU (cheap,
    # hidden under the DMA) instead of a separate wrapper-side pre-pass.
    x = x_ref[...].astype(jnp.bfloat16)

    # Layer 1: bf16 MXU matmul with f32 accumulation; bias + ReLU in bf16.
    h = jnp.dot(x, w1_ref[...], preferred_element_type=jnp.float32)
    h = jnp.maximum(h.astype(jnp.bfloat16) + b1_ref[...], 0.0)
    # Layer 2
    h = jnp.dot(h, w2_ref[...], preferred_element_type=jnp.float32)
    h = jnp.maximum(h.astype(jnp.bfloat16) + b2_ref[...], 0.0)
    # Layer 3
    h = jnp.dot(h, w3_ref[...], preferred_element_type=jnp.float32)
    h = jnp.maximum(h.astype(jnp.bfloat16) + b3_ref[...], 0.0)
    # Layer 4 (logits): f32 accumulate + f32 bias, bf16 store (halves writeback).
    logits = jnp.dot(h, w4_ref[...], preferred_element_type=jnp.float32)
    out_ref[...] = (logits + b4_ref[...]).astype(out_ref.dtype)


def mlp_forward(x, params, *, block_batch=2048):
    """Full MLP forward pass as one batch-tiled Pallas kernel.

    x: (batch, input_size) float32
    params: [(w, b)] * 4, w as (in_features, out_features), b as (1, out).
    Returns (batch, class_number) float32 logits (bf16 matmul precision).
    """
    (w1, b1), (w2, b2), (w3, b3), (w4, b4) = params
    batch, in_features = x.shape
    hidden = w1.shape[1]
    class_number = w4.shape[1]

    h_pad = _round_up(hidden, LANE)
    c_pad = _round_up(class_number, LANE)

    # Pad batch only to the 8-sublane minimum (usually a no-op), then pick an
    # adaptive tile so the last grid step is mostly full instead of rounding
    # the whole batch up to a multiple of the tile.
    batch8 = _round_up(batch, SUBLANE)
    n_steps = max(1, _cdiv(batch8, block_batch))
    tb = _round_up(_cdiv(batch8, n_steps), SUBLANE)
    grid = (_cdiv(batch8, tb),)   # partial last block: OOB reads unused rows,
                                  # OOB writes are masked.

    xp = x.astype(jnp.float32)
    if batch8 != batch:
        xp = jnp.pad(xp, ((0, batch8 - batch), (0, 0)))

    def pad_to(a, shape):
        return jnp.pad(a, [(0, t - s) for s, t in zip(a.shape, shape)])

    # Weights in bf16 (native MXU input type); hidden/class dims zero-padded
    # to 128 lanes so every matmul / the output store is lane-dense.  The K
    # dim of layer 1 stays at the raw in_features: the x block uses the full
    # feature extent, so no padded copy of x is ever materialized.
    w1p = pad_to(w1, (in_features, h_pad)).astype(jnp.bfloat16)
    w2p = pad_to(w2, (h_pad, h_pad)).astype(jnp.bfloat16)
    w3p = pad_to(w3, (h_pad, h_pad)).astype(jnp.bfloat16)
    w4p = pad_to(w4, (h_pad, c_pad)).astype(jnp.bfloat16)
    b1p = pad_to(b1, (1, h_pad)).astype(jnp.bfloat16)
    b2p = pad_to(b2, (1, h_pad)).astype(jnp.bfloat16)
    b3p = pad_to(b3, (1, h_pad)).astype(jnp.bfloat16)
    b4p = pad_to(b4, (1, c_pad)).astype(jnp.float32)

    x_spec = pl.BlockSpec((tb, in_features), lambda i: (i, 0))
    out_spec = pl.BlockSpec((tb, c_pad), lambda i: (i, 0))
    # Weights/biases: constant block index -> fetched once, VMEM-resident
    # across all grid steps (never re-DMA'd; only x/out tiles are pipelined).
    const2d = lambda a: pl.BlockSpec(a.shape, lambda i: (0, 0))

    flops = 2 * batch8 * (in_features * h_pad + 2 * h_pad * h_pad
                          + h_pad * c_pad)
    bytes_accessed = (
        xp.size * 4                                                  # f32 x
        + (w1p.size + w2p.size + w3p.size + w4p.size) * 2            # bf16 W
        + (b1p.size + b2p.size + b3p.size) * 2 + b4p.size * 4        # biases
        + batch8 * c_pad * 2)                                        # bf16 out

    out_padded = pl.pallas_call(
        _mlp_kernel,
        out_shape=jax.ShapeDtypeStruct((batch8, c_pad), jnp.bfloat16),
        grid=grid,
        in_specs=[x_spec,
                  const2d(w1p), const2d(b1p),
                  const2d(w2p), const2d(b2p),
                  const2d(w3p), const2d(b3p),
                  const2d(w4p), const2d(b4p)],
        out_specs=out_spec,
        compiler_params=pltpu.CompilerParams(
            dimension_semantics=("parallel",)),
        cost_estimate=pl.CostEstimate(
            flops=flops, transcendentals=0, bytes_accessed=bytes_accessed),
    )(xp, w1p, b1p, w2p, b2p, w3p, b3p, w4p, b4p)

    # Drop padded batch rows / padded class lanes (padded lanes are exactly
    # zero since w4/b4 are zero-padded) and upcast to f32 (`logits.float()`).
    return out_padded[:batch, :class_number].astype(jnp.float32)


def init_params(key, input_size, class_number, hidden=60):
    """torch.nn.Linear-style init U(-1/sqrt(fan_in), 1/sqrt(fan_in)).
    Weights stored as (in_features, out_features) for x @ W."""
    dims = [(input_size, hidden), (hidden, hidden), (hidden, hidden),
            (hidden, class_number)]
    params = []
    for fan_in, fan_out in dims:
        key, kw, kb = jax.random.split(key, 3)
        bound = 1.0 / math.sqrt(fan_in)
        w = jax.random.uniform(kw, (fan_in, fan_out), jnp.float32,
                               minval=-bound, maxval=bound)
        b = jax.random.uniform(kb, (1, fan_out), jnp.float32,
                               minval=-bound, maxval=bound)
        params.append((w, b))
    return params


def reference_forward_bf16(x, params):
    """Pure-JAX reference matching the kernel's numeric recipe exactly
    (bf16 MXU inputs, f32 accumulation, bf16 bias+ReLU, bf16 logits)."""
    h = x.astype(jnp.bfloat16)
    n = len(params)
    out = None
    for i, (w, b) in enumerate(params):
        acc = jnp.dot(h, w.astype(jnp.bfloat16),
                      preferred_element_type=jnp.float32)
        if i < n - 1:
            h = jnp.maximum(acc.astype(jnp.bfloat16) + b.astype(jnp.bfloat16),
                            0.0)
        else:
            out = (acc + b).astype(jnp.bfloat16)
    return out.astype(jnp.float32)


def reference_forward_f32(x, params):
    """Full-precision reference matching the PyTorch module."""
    h = x
    for i, (w, b) in enumerate(params):
        h = h @ w + b
        if i < len(params) - 1:
            h = jnp.maximum(h, 0.0)
    return h.astype(jnp.float32)


if __name__ == "__main__":
    key = jax.random.PRNGKey(0)
    batch, input_size, class_number = 8, 32, 10

    k_x, k_p = jax.random.split(key)
    x = jax.random.normal(k_x, (batch, input_size), dtype=jnp.float32)
    params = init_params(k_p, input_size, class_number)

    out = jax.block_until_ready(mlp_forward(x, params))

    assert out.shape == (batch, class_number)
    assert out.dtype == jnp.float32

    ref_bf16 = reference_forward_bf16(x, params)
    ref_f32 = reference_forward_f32(x, params)
    assert jnp.allclose(out, ref_bf16, atol=2e-2, rtol=2e-2), \
        "mismatch vs bf16-matched reference"
    assert jnp.allclose(out, ref_f32, atol=7e-2, rtol=7e-2), \
        "mismatch vs f32 reference"

    print("KERNEL_OK")
</pallas_src>

<mosaic_0001>
module attributes {stable_mosaic.version = 11 : i64} {
  func.func @_mlp_kernel(%arg0: i32, %arg1: memref<8x32xf32, #tpu.memory_space<vmem>>, %arg2: memref<32x128xbf16, #tpu.memory_space<vmem>>, %arg3: memref<1x128xbf16, #tpu.memory_space<vmem>>, %arg4: memref<128x128xbf16, #tpu.memory_space<vmem>>, %arg5: memref<1x128xbf16, #tpu.memory_space<vmem>>, %arg6: memref<128x128xbf16, #tpu.memory_space<vmem>>, %arg7: memref<1x128xbf16, #tpu.memory_space<vmem>>, %arg8: memref<128x128xbf16, #tpu.memory_space<vmem>>, %arg9: memref<1x128xf32, #tpu.memory_space<vmem>>, %arg10: memref<8x128xbf16, #tpu.memory_space<vmem>>) attributes {dimension_semantics = [#tpu.dimension_semantics<parallel>], iteration_bounds = array<i64: 1>, scalar_prefetch = 0 : i64, scratch_operands = 0 : i64, tpu.core_type = #tpu.core_type<tc>, window_params = [{transform_indices = @transform_0, window_bounds = array<i64: 8, 32>}, {pipeline_mode = #tpu.pipeline_mode<synchronous>, transform_indices = @transform_1, window_bounds = array<i64: 32, 128>}, {pipeline_mode = #tpu.pipeline_mode<synchronous>, transform_indices = @transform_2, window_bounds = array<i64: 1, 128>}, {pipeline_mode = #tpu.pipeline_mode<synchronous>, transform_indices = @transform_3, window_bounds = array<i64: 128, 128>}, {pipeline_mode = #tpu.pipeline_mode<synchronous>, transform_indices = @transform_4, window_bounds = array<i64: 1, 128>}, {pipeline_mode = #tpu.pipeline_mode<synchronous>, transform_indices = @transform_5, window_bounds = array<i64: 128, 128>}, {pipeline_mode = #tpu.pipeline_mode<synchronous>, transform_indices = @transform_6, window_bounds = array<i64: 1, 128>}, {pipeline_mode = #tpu.pipeline_mode<synchronous>, transform_indices = @transform_7, window_bounds = array<i64: 128, 128>}, {pipeline_mode = #tpu.pipeline_mode<synchronous>, transform_indices = @transform_8, window_bounds = array<i64: 1, 128>}, {transform_indices = @transform_9, window_bounds = array<i64: 8, 128>}]} {
    %c0 = arith.constant 0 : index
    %c0_0 = arith.constant 0 : index
    %0 = vector.load %arg1[%c0, %c0_0] : memref<8x32xf32, #tpu.memory_space<vmem>>, vector<8x32xf32>
    %1 = arith.truncf %0 : vector<8x32xf32> to vector<8x32xbf16>
    %c0_1 = arith.constant 0 : index
    %c0_2 = arith.constant 0 : index
    %2 = vector.load %arg2[%c0_1, %c0_2] : memref<32x128xbf16, #tpu.memory_space<vmem>>, vector<32x128xbf16>
    %cst = arith.constant dense<0.000000e+00> : vector<8x128xf32>
    %3 = tpu.matmul %1, %2, %cst {dimension_numbers = #tpu.dot_dimension_numbers<[1], [0], [0], [1], [0, 0, 1, 1], [], []>} : vector<8x32xbf16>, vector<32x128xbf16>, vector<8x128xf32> -> vector<8x128xf32>
    %4 = arith.truncf %3 : vector<8x128xf32> to vector<8x128xbf16>
    %c0_3 = arith.constant 0 : index
    %c0_4 = arith.constant 0 : index
    %5 = vector.load %arg3[%c0_3, %c0_4] : memref<1x128xbf16, #tpu.memory_space<vmem>>, vector<1x128xbf16>
    %6 = vector.broadcast %5 : vector<1x128xbf16> to vector<8x128xbf16>
    %7 = arith.addf %4, %6 : vector<8x128xbf16>
    %cst_5 = arith.constant 0.000000e+00 : bf16
    %8 = vector.broadcast %cst_5 : bf16 to vector<8x128xbf16>
    %9 = arith.maximumf %7, %8 : vector<8x128xbf16>
    %c0_6 = arith.constant 0 : index
    %c0_7 = arith.constant 0 : index
    %10 = vector.load %arg4[%c0_6, %c0_7] : memref<128x128xbf16, #tpu.memory_space<vmem>>, vector<128x128xbf16>
    %cst_8 = arith.constant dense<0.000000e+00> : vector<8x128xf32>
    %11 = tpu.matmul %9, %10, %cst_8 {dimension_numbers = #tpu.dot_dimension_numbers<[1], [0], [0], [1], [0, 0, 1, 1], [], []>} : vector<8x128xbf16>, vector<128x128xbf16>, vector<8x128xf32> -> vector<8x128xf32>
    %12 = arith.truncf %11 : vector<8x128xf32> to vector<8x128xbf16>
    %c0_9 = arith.constant 0 : index
    %c0_10 = arith.constant 0 : index
    %13 = vector.load %arg5[%c0_9, %c0_10] : memref<1x128xbf16, #tpu.memory_space<vmem>>, vector<1x128xbf16>
    %14 = vector.broadcast %13 : vector<1x128xbf16> to vector<8x128xbf16>
    %15 = arith.addf %12, %14 : vector<8x128xbf16>
    %cst_11 = arith.constant 0.000000e+00 : bf16
    %16 = vector.broadcast %cst_11 : bf16 to vector<8x128xbf16>
    %17 = arith.maximumf %15, %16 : vector<8x128xbf16>
    %c0_12 = arith.constant 0 : index
    %c0_13 = arith.constant 0 : index
    %18 = vector.load %arg6[%c0_12, %c0_13] : memref<128x128xbf16, #tpu.memory_space<vmem>>, vector<128x128xbf16>
    %cst_14 = arith.constant dense<0.000000e+00> : vector<8x128xf32>
    %19 = tpu.matmul %17, %18, %cst_14 {dimension_numbers = #tpu.dot_dimension_numbers<[1], [0], [0], [1], [0, 0, 1, 1], [], []>} : vector<8x128xbf16>, vector<128x128xbf16>, vector<8x128xf32> -> vector<8x128xf32>
    %20 = arith.truncf %19 : vector<8x128xf32> to vector<8x128xbf16>
    %c0_15 = arith.constant 0 : index
    %c0_16 = arith.constant 0 : index
    %21 = vector.load %arg7[%c0_15, %c0_16] : memref<1x128xbf16, #tpu.memory_space<vmem>>, vector<1x128xbf16>
    %22 = vector.broadcast %21 : vector<1x128xbf16> to vector<8x128xbf16>
    %23 = arith.addf %20, %22 : vector<8x128xbf16>
    %cst_17 = arith.constant 0.000000e+00 : bf16
    %24 = vector.broadcast %cst_17 : bf16 to vector<8x128xbf16>
    %25 = arith.maximumf %23, %24 : vector<8x128xbf16>
    %c0_18 = arith.constant 0 : index
    %c0_19 = arith.constant 0 : index
    %26 = vector.load %arg8[%c0_18, %c0_19] : memref<128x128xbf16, #tpu.memory_space<vmem>>, vector<128x128xbf16>
    %cst_20 = arith.constant dense<0.000000e+00> : vector<8x128xf32>
    %27 = tpu.matmul %25, %26, %cst_20 {dimension_numbers = #tpu.dot_dimension_numbers<[1], [0], [0], [1], [0, 0, 1, 1], [], []>} : vector<8x128xbf16>, vector<128x128xbf16>, vector<8x128xf32> -> vector<8x128xf32>
    %c0_21 = arith.constant 0 : index
    %c0_22 = arith.constant 0 : index
    %28 = vector.load %arg9[%c0_21, %c0_22] : memref<1x128xf32, #tpu.memory_space<vmem>>, vector<1x128xf32>
    %29 = vector.broadcast %28 : vector<1x128xf32> to vector<8x128xf32>
    %30 = arith.addf %27, %29 : vector<8x128xf32>
    %31 = arith.truncf %30 : vector<8x128xf32> to vector<8x128xbf16>
    %c0_23 = arith.constant 0 : index
    %c0_24 = arith.constant 0 : index
    %32 = vector.load %arg10[%c0_23, %c0_24] : memref<8x128xbf16, #tpu.memory_space<vmem>>, vector<8x128xbf16>
    tpu.vector_store %arg10[%c0_23, %c0_24], %31 {strides = array<i32>} : memref<8x128xbf16, #tpu.memory_space<vmem>>, vector<8x128xbf16>,
    return
  }
  func.func @transform_0(%arg0: i32) -> (i32, i32) {
    %c0_i32 = arith.constant 0 : i32
    %c0_i32_0 = arith.constant 0 : i32
    return %arg0, %c0_i32 : i32, i32
  }
  func.func @transform_1(%arg0: i32) -> (i32, i32) {
    %c0_i32 = arith.constant 0 : i32
    %c0_i32_0 = arith.constant 0 : i32
    %c0_i32_1 = arith.constant 0 : i32
    return %c0_i32, %c0_i32_0 : i32, i32
  }
  func.func @transform_2(%arg0: i32) -> (i32, i32) {
    %c0_i32 = arith.constant 0 : i32
    %c0_i32_0 = arith.constant 0 : i32
    %c0_i32_1 = arith.constant 0 : i32
    return %c0_i32, %c0_i32_0 : i32, i32
  }
  func.func @transform_3(%arg0: i32) -> (i32, i32) {
    %c0_i32 = arith.constant 0 : i32
    %c0_i32_0 = arith.constant 0 : i32
    %c0_i32_1 = arith.constant 0 : i32
    return %c0_i32, %c0_i32_0 : i32, i32
  }
  func.func @transform_4(%arg0: i32) -> (i32, i32) {
    %c0_i32 = arith.constant 0 : i32
    %c0_i32_0 = arith.constant 0 : i32
    %c0_i32_1 = arith.constant 0 : i32
    return %c0_i32, %c0_i32_0 : i32, i32
  }
  func.func @transform_5(%arg0: i32) -> (i32, i32) {
    %c0_i32 = arith.constant 0 : i32
    %c0_i32_0 = arith.constant 0 : i32
    %c0_i32_1 = arith.constant 0 : i32
    return %c0_i32, %c0_i32_0 : i32, i32
  }
  func.func @transform_6(%arg0: i32) -> (i32, i32) {
    %c0_i32 = arith.constant 0 : i32
    %c0_i32_0 = arith.constant 0 : i32
    %c0_i32_1 = arith.constant 0 : i32
    return %c0_i32, %c0_i32_0 : i32, i32
  }
  func.func @transform_7(%arg0: i32) -> (i32, i32) {
    %c0_i32 = arith.constant 0 : i32
    %c0_i32_0 = arith.constant 0 : i32
    %c0_i32_1 = arith.constant 0 : i32
    return %c0_i32, %c0_i32_0 : i32, i32
  }
  func.func @transform_8(%arg0: i32) -> (i32, i32) {
    %c0_i32 = arith.constant 0 : i32
    %c0_i32_0 = arith.constant 0 : i32
    %c0_i32_1 = arith.constant 0 : i32
    return %c0_i32, %c0_i32_0 : i32, i32
  }
  func.func @transform_9(%arg0: i32) -> (i32, i32) {
    %c0_i32 = arith.constant 0 : i32
    %c0_i32_0 = arith.constant 0 : i32
    return %arg0, %c0_i32 : i32, i32
  }
}

</mosaic_0001>

<bundles_post_ra>
// kernel: tpu_custom_call.1
= control target key start
LH: loop header
LB: loop body
LE: loop exit
PB: predicated region body
PF: predicated region fallthrough
CT: control target
= control target key end

     0   :  { %14 = vsyncpa [#allocation3], 0  ;;  %s1027_s0 = inlined_call_operand.hbm [shape: f32[8,32], index: 0, kind: input, shape index: {}]   ;;  %s1028_s1 = inlined_call_operand.hbm [shape: bf16[32,128], index: 1, kind: input, shape index: {}]   ;;  %s1029_s2 = inlined_call_operand.vmem [shape: bf16[1,128], index: 2, kind: input, shape index: {}]   ;;  %s1030_s3 = inlined_call_operand.hbm [shape: bf16[128,128], index: 3, kind: input, shape index: {}]   ;;  %s1031_s4 = inlined_call_operand.vmem [shape: bf16[1,128], index: 4, kind: input, shape index: {}]   ;;  %s1032_s5 = inlined_call_operand.hbm [shape: bf16[128,128], index: 5, kind: input, shape index: {}]   ;;  %s1033_s6 = inlined_call_operand.vmem [shape: bf16[1,128], index: 6, kind: input, shape index: {}]   ;;  %s1034_s7 = inlined_call_operand.hbm [shape: bf16[128,128], index: 7, kind: input, shape index: {}]   ;;  %s1035_s8 = inlined_call_operand.vmem [shape: f32[1,128], index: 8, kind: input, shape index: {}]   ;;  %s1036_s9 = inlined_call_operand.hbm [shape: bf16[8,128], index: 9, kind: output, shape index: {}]  }
   0x1   :  { %15 = vsyncpa [#allocation6], 0 }
   0x2   :  { %16 = vsyncpa [#allocation9], 0 }
   0x3   :  { %17 = vsyncpa [#allocation4], 0  ;;  %s836_s30 = smov [#allocation5]   ;;  %s696_s13 = scalar_lea.hbm %s1028_s1, 256 }
   0x4   :  { %s33_s10 = sshll.u32 %s836_s30, 4  ;;  %p697_p0 = scmp.ne.s32.totalorder %s1028_s1, %s696_s13  ;;  %s34_s10 = int_to_ptr.vmem [resolvable:$true] %s33_s10 }
   0x5   :  { %p700_p1 = scmp.lt.u32.totalorder %s696_s13, %s1028_s1 }
   0x7   :  { %p702_p2 = pnand %p700_p1, %p697_p0 }
   0x9   :  { %705 = shalt.err (!%p702_p2)
}
   0xa   :  { %s706_s18 = scalar_lea.vmem %s34_s10, 256  ;;  %p711_p4 = scmp.lt.s32.totalorder %s34_s10, %s34_s10 }
   0xb   :  { %p707_p3 = scmp.ne.s32.totalorder %s34_s10, %s706_s18  ;;  %p712_p5 = scmp.lt.s32.totalorder %s706_s18, %s706_s18 }
   0xd   :  { %p713_p6 = por %p712_p5, %p711_p4 }
   0xf   :  { %p714_p7 = pnand %p713_p6, %p707_p3 }
  0x11   :  { %717 = shalt.err (!%p714_p7)
}
  0x12   :  { %s837_s19 = smov 64   ;;  %s838_s20 = smov 4  }
  0x13   :  { %39 = dma.hbm_to_vmem [thread:$0]  %s1028_s1, 256, %s34_s10, [#allocation6], %s837_s19, %s837_s19, %s838_s20  }
  0x14   :  { %s839_s23 = smov [#allocation8]   ;;  %s840_s25 = smov [#allocation2]  }
  0x15   :  { %s61_s24 = sshll.u32 %s839_s23, 4  ;;  %s24_s26 = sshll.u32 %s840_s25, 4  ;;  %s62_s24 = int_to_ptr.vmem [resolvable:$true] %s61_s24  ;;  %s25_s26 = int_to_ptr.vmem [resolvable:$true] %s24_s26 }
  0x16   :  { %s718_s29 = scalar_lea.hbm %s1032_s5, 1024 }
  0x17   :  { %p719_p8 = scmp.ne.s32.totalorder %s1032_s5, %s718_s29  ;;  %p722_p9 = scmp.lt.u32.totalorder %s718_s29, %s1032_s5 }
  0x19   :  { %p724_p10 = pnand %p722_p9, %p719_p8 }
  0x1b   :  { %727 = shalt.err (!%p724_p10)
}
  0x1c   :  { %s728_s1 = scalar_lea.vmem %s62_s24, 1024  ;;  %p733_p12 = scmp.lt.s32.totalorder %s62_s24, %s62_s24 }
  0x1d   :  { %p729_p11 = scmp.ne.s32.totalorder %s62_s24, %s728_s1  ;;  %p734_p13 = scmp.lt.s32.totalorder %s728_s1, %s728_s1 }
  0x1f   :  { %p735_p0 = por %p734_p13, %p733_p12 }
  0x21   :  { %p736_p1 = pnand %p735_p0, %p729_p11 }
  0x23   :  { %739 = shalt.err (!%p736_p1)
}
  0x24   :  { %67 = dma.hbm_to_vmem [thread:$0]  %s1032_s5, 1024, %s62_s24, [#allocation9], %s837_s19, %s837_s19, %s838_s20  }
  0x25   :  { %s740_s17 = scalar_lea.hbm %s1027_s0, 128 }
  0x26   :  { %p741_p2 = scmp.ne.s32.totalorder %s1027_s0, %s740_s17  ;;  %p744_p3 = scmp.lt.u32.totalorder %s740_s17, %s1027_s0 }
  0x28   :  { %p746_p4 = pnand %p744_p3, %p741_p2 }
  0x2a   :  { %749 = shalt.err (!%p746_p4)
}
  0x2b   :  { %s750_s25 = scalar_lea.vmem %s25_s26, 128  ;;  %p755_p6 = scmp.lt.s32.totalorder %s25_s26, %s25_s26 }
  0x2c   :  { %p751_p5 = scmp.ne.s32.totalorder %s25_s26, %s750_s25  ;;  %p756_p7 = scmp.lt.s32.totalorder %s750_s25, %s750_s25 }
  0x2e   :  { %p757_p8 = por %p756_p7, %p755_p6 }
  0x30   :  { %p758_p9 = pnand %p757_p8, %p751_p5 }
  0x32   :  { %761 = shalt.err (!%p758_p9)
}
  0x33   :  { %27 = dma.hbm_to_vmem [thread:$0]  %s1027_s0, 128, %s25_s26, [#allocation3]  }
  0x34   :  { %s841_s27 = smov [#allocation7]   ;;  %s842_s29 = smov [#allocation10]  }
  0x35   :  { %s47_s28 = sshll.u32 %s841_s27, 4  ;;  %s75_s30 = sshll.u32 %s842_s29, 4  ;;  %s48_s28 = int_to_ptr.vmem [resolvable:$true] %s47_s28  ;;  %s76_s30 = int_to_ptr.vmem [resolvable:$true] %s75_s30 }
  0x36   :  { %s762_s13 = scalar_lea.hbm %s1030_s3, 1024 }
  0x37   :  { %p763_p10 = scmp.ne.s32.totalorder %s1030_s3, %s762_s13  ;;  %p766_p11 = scmp.lt.u32.totalorder %s762_s13, %s1030_s3 }
  0x39   :  { %p768_p12 = pnand %p766_p11, %p763_p10 }
  0x3b   :  { %771 = shalt.err (!%p768_p12)
}
  0x3c   :  { %s772_s0 = scalar_lea.vmem %s48_s28, 1024  ;;  %p777_p0 = scmp.lt.s32.totalorder %s48_s28, %s48_s28 }
  0x3d   :  { %p773_p13 = scmp.ne.s32.totalorder %s48_s28, %s772_s0  ;;  %p778_p1 = scmp.lt.s32.totalorder %s772_s0, %s772_s0 }
  0x3f   :  { %p779_p2 = por %p778_p1, %p777_p0 }
  0x41   :  { %p780_p3 = pnand %p779_p2, %p773_p13 }
  0x43   :  { %783 = shalt.err (!%p780_p3)
}
  0x44   :  { %53 = dma.hbm_to_vmem [thread:$0]  %s1030_s3, 1024, %s48_s28, [#allocation6], %s837_s19, %s837_s19, %s838_s20  }
  0x45   :  { %s784_s21 = scalar_lea.hbm %s1034_s7, 1024 }
  0x46   :  { %p785_p4 = scmp.ne.s32.totalorder %s1034_s7, %s784_s21  ;;  %p788_p5 = scmp.lt.u32.totalorder %s784_s21, %s1034_s7 }
  0x48   :  { %p790_p6 = pnand %p788_p5, %p785_p4 }
  0x4a   :  { %793 = shalt.err (!%p790_p6)
}
  0x4b   :  { %s794_s24 = scalar_lea.vmem %s76_s30, 1024  ;;  %p799_p8 = scmp.lt.s32.totalorder %s76_s30, %s76_s30 }
  0x4c   :  { %p795_p7 = scmp.ne.s32.totalorder %s76_s30, %s794_s24  ;;  %p800_p9 = scmp.lt.s32.totalorder %s794_s24, %s794_s24 }
  0x4e   :  { %p801_p10 = por %p800_p9, %p799_p8 }
  0x50   :  { %p802_p11 = pnand %p801_p10, %p795_p7 }
  0x52   :  { %805 = shalt.err (!%p802_p11)
}
  0x53   :  { %81 = dma.hbm_to_vmem [thread:$0]  %s1034_s7, 1024, %s76_s30, [#allocation9], %s837_s19, %s837_s19, %s838_s20  }
  0x54   :  { %828 = dma.done.wait [#allocation3], 128  }
  0x55   :  { %829 = vsyncadd [#allocation3], 4294967168 }
  0x56   :  { %830 = dma.done.wait [#allocation6], 1280  }
  0x57   :  { %831 = vsyncadd [#allocation6], 4294966016 }
  0x58   :  { %832 = dma.done.wait [#allocation9], 2048  }
  0x59   :  { %833 = vsyncadd [#allocation9], 4294965248  ;;  %v843_v0 = vmov 0.0   ;;  %vm844_vm0 = vmmov 0   ;;  %v670_v1 = vld [vmem:[#allocation5] sm:$0xff]   ;;  %v671_v2 = vld [vmem:[#allocation5 + $0x8] sm:$0xff]   ;;  %v167_v19 = vlaneseq }
  0x5a   :  { %591 = vmatprep.subr.bf16.mxu0 %v843_v0  ;;  %595 = vmatprep.mubr.msk.bf16.mxu0 %vm844_vm0, %v843_v0  ;;  %v100_v3 = vld [vmem:[#allocation2] sm:$0xff]  ;;  %v672_v4 = vld [vmem:[#allocation7] sm:$0xff]   ;;  %vm118_vm1 = vcmask 261120   ;;  %v674_v7 = vld [vmem:[#allocation7 + $0x10] sm:$0xff]   ;;  %v845_v31 = vmov 0   ;;  %s846_s11 = smov [#allocation11]  }
  0x5b   :  { %599 = vmatprep.subr.bf16.mxu1 %v843_v0  ;;  %615 = vmatprep.mubr.msk.bf16.mxu1 %vm844_vm0, %v843_v0  ;;  %v101_v5 = vpack.c.bf16 %v100_v3, %v100_v3  ;;  %v673_v6 = vld [vmem:[#allocation7 + $0x8] sm:$0xff]   ;;  %v675_v8 = vld [vmem:[#allocation7 + $0x18] sm:$0xff]   ;;  %v676_v9 = vld [vmem:[#allocation7 + $0x20] sm:$0xff]   ;;  %v168_v20 = vshrl.u32 %v167_v19, 7  ;;  %s522_s12 = sshll.u32 %s846_s11, 4  ;;  %s523_s12 = int_to_ptr.vmem [resolvable:$true] %s522_s12 }
  0x5c   :  { %592 = vmatpush3.bf16.msra.mxu0 %v670_v1  ;;  %600 = vmatpush3.bf16.msra.mxu1 %v672_v4  ;;  %v677_v10 = vld [vmem:[#allocation7 + $0x28] sm:$0xff]   ;;  %v678_v11 = vld [vmem:[#allocation7 + $0x30] sm:$0xff]   ;;  %v679_v12 = vld [vmem:[#allocation7 + $0x38] sm:$0xff]   ;;  %p811_p13 = scmp.lt.s32.totalorder %s523_s12, %s523_s12 }
  0x5d   :  { %593 = vmatprep.subr.bf16.mxu0 %v843_v0  ;;  %601 = vmatprep.subr.bf16.mxu1 %v843_v0  ;;  %v680_v13 = vld [vmem:[#allocation8] sm:$0xff]   ;;  %v681_v14 = vld [vmem:[#allocation8 + $0x8] sm:$0xff]   ;;  %v682_v15 = vld [vmem:[#allocation8 + $0x10] sm:$0xff]   ;;  %v169_v23 = vsub.s32 0, %v168_v20 }
  0x5e   :  { %v683_v16 = vld [vmem:[#allocation8 + $0x18] sm:$0xff]   ;;  %v684_v17 = vld [vmem:[#allocation8 + $0x20] sm:$0xff]   ;;  %v685_v18 = vld [vmem:[#allocation8 + $0x28] sm:$0xff]  }
  0x5f   :  { %v163_v21 = vld [vmem:[%s1029_s2] sm:$0x1]  ;;  %v686_v33 = vld [vmem:[#allocation8 + $0x30] sm:$0xff]   ;;  %v687_v34 = vld [vmem:[#allocation8 + $0x38] sm:$0xff]  }
  0x60   :  { %594 = vmatpush3.bf16.msra.mxu0 %v671_v2  ;;  %602 = vmatpush3.bf16.msra.mxu1 %v673_v6  ;;  %v165_v22 = vpack.i.b16 %v163_v21, %v163_v21  ;;  %v688_v35 = vld [vmem:[#allocation10] sm:$0xff]   ;;  %v689_v36 = vld [vmem:[#allocation10 + $0x8] sm:$0xff]   ;;  %v690_v37 = vld [vmem:[#allocation10 + $0x10] sm:$0xff]  }
  0x61   :  { %619 = vmatprep.subr.bf16.mxu0 %v843_v0  ;;  %603 = vmatprep.subr.bf16.mxu1 %v843_v0  ;;  %v691_v38 = vld [vmem:[#allocation10 + $0x18] sm:$0xff]   ;;  %v692_v39 = vld [vmem:[#allocation10 + $0x20] sm:$0xff]   ;;  %v693_v40 = vld [vmem:[#allocation10 + $0x28] sm:$0xff]  }
  0x62   :  { %v170_v24 = vrot.slane %v165_v22, %v169_v23  ;;  %v278_v41 = vld [vmem:[%s1031_s4] sm:$0x1]  ;;  %v694_v51 = vld [vmem:[#allocation10 + $0x30] sm:$0xff]   ;;  %v695_v52 = vld [vmem:[#allocation10 + $0x38] sm:$0xff]  }
  0x63   :  { %596 = vmatmul.mubr.msk.bf16.vlgmr.msra.gmra.mrb[0].mxu0 %vm118_vm1, %v101_v5  ;;  %v280_v42 = vpack.i.b16 %v278_v41, %v278_v41  ;;  %v393_v53 = vld [vmem:[%s1033_s6] sm:$0x1]  ;;  %s806_s6 = scalar_lea.vmem %s523_s12, 64 }
  0x64   :  { %635 = vmatprep.mubr.msk.bf16.mxu0 %vm844_vm0, %v843_v0  ;;  %604 = vmatpush3.bf16.msra.mxu1 %v674_v7  ;;  %v395_v54 = vpack.i.b16 %v393_v53, %v393_v53  ;;  %v552_v63 = vld [vmem:[%s1035_s8] ss:$0 sm:$0xff]  ;;  %p807_p12 = scmp.ne.s32.totalorder %s523_s12, %s806_s6  ;;  %p812_p0 = scmp.lt.s32.totalorder %s806_s6, %s806_s6 }
  0x65   :  { %605 = vmatprep.subr.bf16.mxu1 %v843_v0  ;;  %620 = vmatpush3.bf16.msra.mxu0 %v680_v13  ;;  %v285_v43 = vrot.slane %v280_v42, %v169_v23 }
  0x66   :  { %621 = vmatprep.subr.bf16.mxu0 %v843_v0  ;;  %v400_v55 = vrot.slane %v395_v54, %v169_v23  ;;  %p813_p1 = por %p812_p0, %p811_p13 }
  0x68   :  { %606 = vmatpush3.bf16.msra.mxu1 %v675_v8  ;;  %p814_p2 = pnand %p813_p1, %p807_p12 }
  0x69   :  { %607 = vmatprep.subr.bf16.mxu1 %v843_v0  ;;  %622 = vmatpush3.bf16.msra.mxu0 %v681_v14 }
  0x6a   :  { %623 = vmatprep.subr.bf16.mxu0 %v843_v0 }
  0x6c   :  { %608 = vmatpush3.bf16.msra.mxu1 %v676_v9 }
  0x6d   :  { %609 = vmatprep.subr.bf16.mxu1 %v843_v0  ;;  %624 = vmatpush3.bf16.msra.mxu0 %v682_v15 }
  0x6e   :  { %625 = vmatprep.subr.bf16.mxu0 %v843_v0 }
  0x70   :  { %610 = vmatpush3.bf16.msra.mxu1 %v677_v10 }
  0x71   :  { %611 = vmatprep.subr.bf16.mxu1 %v843_v0  ;;  %626 = vmatpush3.bf16.msra.mxu0 %v683_v16 }
  0x72   :  { %627 = vmatprep.subr.bf16.mxu0 %v843_v0 }
  0x74   :  { %612 = vmatpush3.bf16.msra.mxu1 %v678_v11 }
  0x75   :  { %613 = vmatprep.subr.bf16.mxu1 %v843_v0  ;;  %628 = vmatpush3.bf16.msra.mxu0 %v684_v17 }
  0x76   :  { %629 = vmatprep.subr.bf16.mxu0 %v843_v0 }
  0x78   :  { %614 = vmatpush3.bf16.msra.mxu1 %v679_v12 }
  0x79   :  { %639 = vmatprep.subr.bf16.mxu1 %v843_v0  ;;  %630 = vmatpush3.bf16.msra.mxu0 %v685_v18 }
  0x7a   :  { %631 = vmatprep.subr.bf16.mxu0 %v843_v0 }
  0x7d   :  { %632 = vmatpush3.bf16.msra.mxu0 %v686_v33 }
  0x7e   :  { %633 = vmatprep.subr.bf16.mxu0 %v843_v0 }
  0x81   :  { %634 = vmatpush3.bf16.msra.mxu0 %v687_v34 }
 0x136   :  { %v156_v25 = vpop.f32.mrb[0].mxu0 }
 0x137   :  { %v162_v26 = vpack.c.bf16 %v156_v25, %v156_v25  ;;  %v597_v27 = vpop.f32.mrb[1].mxu0 }
 0x138   :  { %v159_v28 = vpop.f32.mrb[2].mxu0 }
 0x139   :  { %v171_v29 = vadd.bf16 %v170_v24, %v162_v26  ;;  %v598_v30 = vpop.f32.mrb[3].mxu0 }
 0x13b   :  { %v172_v32 = vmax.bf16 %v845_v31, %v171_v29 }
 0x13d   :  { %616 = vmatmul.mubr.bf16.vlgmr.msra.gmra.mrb[0].mxu1 %v172_v32 }
 0x13e   :  { %655 = vmatprep.mubr.msk.bf16.mxu1 %vm844_vm0, %v843_v0  ;;  %640 = vmatpush3.bf16.msra.mxu1 %v688_v35 }
 0x13f   :  { %641 = vmatprep.subr.bf16.mxu1 %v843_v0 }
 0x142   :  { %642 = vmatpush3.bf16.msra.mxu1 %v689_v36 }
 0x143   :  { %643 = vmatprep.subr.bf16.mxu1 %v843_v0 }
 0x146   :  { %644 = vmatpush3.bf16.msra.mxu1 %v690_v37 }
 0x147   :  { %645 = vmatprep.subr.bf16.mxu1 %v843_v0 }
 0x14a   :  { %646 = vmatpush3.bf16.msra.mxu1 %v691_v38 }
 0x14b   :  { %647 = vmatprep.subr.bf16.mxu1 %v843_v0 }
 0x14e   :  { %648 = vmatpush3.bf16.msra.mxu1 %v692_v39 }
 0x14f   :  { %649 = vmatprep.subr.bf16.mxu1 %v843_v0 }
 0x152   :  { %650 = vmatpush3.bf16.msra.mxu1 %v693_v40 }
 0x153   :  { %651 = vmatprep.subr.bf16.mxu1 %v843_v0 }
 0x156   :  { %652 = vmatpush3.bf16.msra.mxu1 %v694_v51 }
 0x157   :  { %653 = vmatprep.subr.bf16.mxu1 %v843_v0 }
 0x15a   :  { %654 = vmatpush3.bf16.msra.mxu1 %v695_v52 }
 0x210   :  { %v271_v44 = vpop.f32.mrb[0].mxu1 }
 0x211   :  { %v277_v45 = vpack.c.bf16 %v271_v44, %v271_v44  ;;  %v617_v46 = vpop.f32.mrb[1].mxu1 }
 0x212   :  { %v274_v47 = vpop.f32.mrb[2].mxu1 }
 0x213   :  { %v286_v48 = vadd.bf16 %v285_v43, %v277_v45  ;;  %v618_v49 = vpop.f32.mrb[3].mxu1 }
 0x215   :  { %v287_v50 = vmax.bf16 %v845_v31, %v286_v48 }
 0x217   :  { %636 = vmatmul.mubr.bf16.vlgmr.msra.gmra.mrb[4].mxu0 %v287_v50 }
 0x2ea   :  { %v386_v56 = vpop.f32.mrb[4].mxu0 }
 0x2eb   :  { %v392_v57 = vpack.c.bf16 %v386_v56, %v386_v56  ;;  %v637_v58 = vpop.f32.mrb[5].mxu0 }
 0x2ec   :  { %v389_v59 = vpop.f32.mrb[6].mxu0 }
 0x2ed   :  { %v401_v60 = vadd.bf16 %v400_v55, %v392_v57  ;;  %v638_v61 = vpop.f32.mrb[7].mxu0 }
 0x2ef   :  { %v402_v62 = vmax.bf16 %v845_v31, %v401_v60 }
 0x2f1   :  { %656 = vmatmul.mubr.bf16.vlgmr.msra.gmra.mrb[4].mxu1 %v402_v62 }
 0x3c4   :  { %v508_v0 = vpop.f32.mrb[4].mxu1 }
 0x3c5   :  { %v509_v1 = vadd.f32 %v552_v63, %v508_v0  ;;  %v657_v2 = vpop.f32.mrb[5].mxu1 }
 0x3c6   :  { %v511_v3 = vpop.f32.mrb[6].mxu1 }
 0x3c7   :  { %v514_v4 = vpack.c.bf16 %v509_v1, %v509_v1  ;;  %v658_v5 = vpop.f32.mrb[7].mxu1 }
 0x3c9   :  { %515 = vst [vmem:[#allocation11] sm:$0xf] %v514_v4 }
 0x3ca   :  { %817 = shalt.err (!%p814_p2)
}
 0x3cb   :  { %s818_s8 = scalar_lea.hbm %s1036_s9, 64 }
 0x3cc   :  { %p819_p3 = scmp.ne.s32.totalorder %s1036_s9, %s818_s8  ;;  %p822_p4 = scmp.lt.u32.totalorder %s818_s8, %s1036_s9 }
 0x3ce   :  { %p824_p5 = pnand %p822_p4, %p819_p3 }
 0x3d0   :  { %827 = shalt.err (!%p824_p5)
}
 0x3d1   :  { %525 = dma.vmem_to_hbm [thread:$0]  %s523_s12, 64, %s1036_s9, [#allocation4]  }
 0x3d2   :  { %834 = dma.done.wait [#allocation4], 64  }
 0x3d3   :  { %835 = vsyncadd [#allocation4], 4294967232 }
 0x3d4   :  { %529 = vsyncpa [#allocation3], 1 }
 0x3d5   :  { %530 = vsyncpa [#allocation6], 1 }
 0x3d6   :  { %531 = vsyncpa [#allocation9], 1 }
 0x3d7   :  { %532 = vsyncpa [#allocation4], 1 }

</bundles_post_ra>
